<compile_context>
chip_gen: v6e
topology: v6e:2x2x1
jax: 0.10.0
libtpu: 0.0.40
codegen_flags: <defaults>
</compile_context>

<pallas_src>
import jax
import jax.numpy as jnp
from jax import lax
from jax.experimental import pallas as pl
from jax.experimental.pallas import tpu as pltpu

COS_EMBED = 64  # cos_embedding_dim == quantile_embed_dim == 64 in the module


def _iqn_eval_kernel(x_ref,      # VMEM (tile_m, Din)   row tile of x
                     wfull_ref,  # VMEM (Q*out, Din)    qr_head x-weights tiled Q times
                     off_ref,    # VMEM (Q*out, 1)      per-(quantile,out) offset
                     out_ref):   # VMEM (Q*out, tile_m) output slab (lane-dense)
    # (Q*out, Din) @ (tile_m, Din)^T -> (Q*out, tile_m); the rhs transpose is
    # performed on-chip by Mosaic (XLU), no wrapper-side HBM transpose pass.
    base = lax.dot_general(
        wfull_ref[...], x_ref[...],
        dimension_numbers=(((1,), (1,)), ((), ())),
        preferred_element_type=jnp.float32)
    out_ref[...] = (base + off_ref[...]).astype(out_ref.dtype)


def _round_up(v, m):
    return (v + m - 1) // m * m


def _tile_plan(M, tile_m):
    """128-aligned, balanced row tiles; >=2 grid steps when M permits (v7x)."""
    m_pad = _round_up(M, 128)
    tile_m = min(max(128, _round_up(tile_m, 128)), m_pad)
    num_tiles = pl.cdiv(m_pad, tile_m)
    if m_pad >= 256:           # give both v7x TensorCores something to do
        num_tiles = max(num_tiles, 2)
    tile_m = _round_up(pl.cdiv(m_pad, num_tiles), 128)
    return tile_m, num_tiles, num_tiles * tile_m


def iqn_head_eval(x, quantile_levels, wqe, bqe, wqr, bqr, *,
                  tile_m=4096, out_dtype=jnp.float32, torch_layout=True):
    """Eval-mode forward of ImplicitQuantileHead.

    x:               (B, N, D_in) float32
    quantile_levels: (Q,) float32
    wqe, bqe:        quantile_embedding Linear params, shapes (64, 64), (64,)
    wqr, bqr:        qr_head Linear params, shapes (out, D_in + 64), (out,)
    returns:         (B, N, out, Q)  if torch_layout (matches torch permute(0,2,3,1))
                     (Q, out, B*N)   if not torch_layout (kernel-native, no extra
                                      HBM permute pass)
    """
    B, N, Din = x.shape
    out_dim = wqr.shape[0]
    Q = int(quantile_levels.shape[0])
    M = B * N

    tile_m, num_tiles, m_grid = _tile_plan(M, tile_m)

    # --- x in natural (rows, features) layout; only 128-row padding. ---
    x2 = x.reshape(M, Din).astype(jnp.float32)
    if m_grid != M:
        x2 = jnp.pad(x2, ((0, m_grid - M), (0, 0)))

    # --- Quantile path, precomputed once (x-independent, tiny). -------------
    qlvl = quantile_levels.astype(jnp.float32)                       # (Q,)
    i_col = jnp.arange(1, COS_EMBED + 1, dtype=jnp.float32)[:, None]  # (64, 1)
    cos_t = jnp.cos(jnp.pi * i_col * qlvl[None, :])                  # (64, Q)
    phi_t = jax.nn.relu(wqe.astype(jnp.float32) @ cos_t
                        + bqe.astype(jnp.float32)[:, None])          # (64, Q)
    wphi = wqr[:, Din:].astype(jnp.float32)                          # (out, 64)
    off_t = wphi @ phi_t + bqr.astype(jnp.float32)[:, None]          # (out, Q)
    # Row r = q*out + o of the flat output corresponds to (quantile q, out o).
    off_flat = off_t.T.reshape(Q * out_dim, 1)                       # (Q*out, 1)

    wx = wqr[:, :Din].astype(jnp.float32)                            # (out, Din)
    wfull = jnp.tile(wx, (Q, 1))                                     # (Q*out, Din)

    preds = pl.pallas_call(
        _iqn_eval_kernel,
        out_shape=jax.ShapeDtypeStruct((Q * out_dim, m_grid), out_dtype),
        grid_spec=pltpu.PrefetchScalarGridSpec(
            num_scalar_prefetch=0,
            grid=(num_tiles,),
            in_specs=[
                pl.BlockSpec((tile_m, Din), lambda i: (i, 0)),
                pl.BlockSpec((Q * out_dim, Din), lambda i: (0, 0)),
                pl.BlockSpec((Q * out_dim, 1), lambda i: (0, 0)),
            ],
            out_specs=pl.BlockSpec((Q * out_dim, tile_m), lambda i: (0, i)),
        ),
        compiler_params=pltpu.CompilerParams(
            dimension_semantics=("parallel",)),
    )(x2, wfull, off_flat)

    preds = preds[:, :M].reshape(Q, out_dim, M)     # drop row padding
    if not torch_layout:
        return preds                                 # (Q, out, M) kernel-native
    preds = jnp.transpose(preds, (2, 1, 0))          # (M, out, Q)
    return preds.reshape(B, N, out_dim, Q)           # torch permute(0,2,3,1)


def iqn_head_eval_ref(x, quantile_levels, wqe, bqe, wqr, bqr):
    """Pure-JAX reference mirroring the PyTorch eval-mode forward."""
    B, N, Din = x.shape
    i = jnp.arange(1, COS_EMBED + 1, dtype=jnp.float32)[None, :]
    preds = []
    for u in quantile_levels:
        u_full = jnp.full((B, 1), u, dtype=jnp.float32)
        cos_f = jnp.cos(jnp.pi * u_full * i)                        # (B, 64)
        phi = jax.nn.relu(cos_f @ wqe.T + bqe)                      # (B, 64)
        phi_e = jnp.broadcast_to(phi[:, None, :], (B, N, COS_EMBED))
        x_aug = jnp.concatenate([x, phi_e], axis=-1)                # (B, N, Din+64)
        preds.append(x_aug @ wqr.T + bqr)                           # (B, N, out)
    preds = jnp.stack(preds, axis=1)                                # (B, Q, N, out)
    return jnp.transpose(preds, (0, 2, 3, 1))                       # (B, N, out, Q)


if __name__ == "__main__":
    B, N, Din, out_dim = 2, 8, 32, 12
    quantiles = jnp.array([0.1, 0.5, 0.9], dtype=jnp.float32)

    key = jax.random.PRNGKey(0)
    kx, k1, k2, k3, k4 = jax.random.split(key, 5)
    x = jax.random.normal(kx, (B, N, Din), dtype=jnp.float32)

    # Deterministic parameter init (shapes follow the nn.Module __init__).
    wqe = 0.1 * jax.random.normal(k1, (COS_EMBED, COS_EMBED), dtype=jnp.float32)
    bqe = 0.1 * jax.random.normal(k2, (COS_EMBED,), dtype=jnp.float32)
    wqr = 0.1 * jax.random.normal(k3, (out_dim, Din + COS_EMBED),
                                  dtype=jnp.float32)
    bqr = 0.1 * jax.random.normal(k4, (out_dim,), dtype=jnp.float32)

    out = iqn_head_eval(x, quantiles, wqe, bqe, wqr, bqr)
    out = jax.block_until_ready(out)

    ref = iqn_head_eval_ref(x, quantiles, wqe, bqe, wqr, bqr)
    assert out.shape == (B, N, out_dim, quantiles.shape[0]), out.shape
    assert jnp.allclose(out, ref, atol=1e-4, rtol=1e-4), (
        float(jnp.max(jnp.abs(out - ref))))

    print("KERNEL_OK")
</pallas_src>

<mosaic_0001>
module attributes {stable_mosaic.version = 11 : i64} {
  func.func @_iqn_eval_kernel(%arg0: i32, %arg1: memref<128x32xf32, #tpu.memory_space<vmem>>, %arg2: memref<36x32xf32, #tpu.memory_space<vmem>>, %arg3: memref<36x1xf32, #tpu.memory_space<vmem>>, %arg4: memref<36x128xf32, #tpu.memory_space<vmem>>) attributes {dimension_semantics = [#tpu.dimension_semantics<parallel>], iteration_bounds = array<i64: 1>, scalar_prefetch = 0 : i64, scratch_operands = 0 : i64, tpu.core_type = #tpu.core_type<tc>, window_params = [{transform_indices = @transform_0, window_bounds = array<i64: 128, 32>}, {pipeline_mode = #tpu.pipeline_mode<synchronous>, transform_indices = @transform_1, window_bounds = array<i64: 36, 32>}, {pipeline_mode = #tpu.pipeline_mode<synchronous>, transform_indices = @transform_2, window_bounds = array<i64: 36, 1>}, {transform_indices = @transform_3, window_bounds = array<i64: 36, 128>}]} {
    %c0 = arith.constant 0 : index
    %c0_0 = arith.constant 0 : index
    %0 = vector.load %arg2[%c0, %c0_0] : memref<36x32xf32, #tpu.memory_space<vmem>>, vector<36x32xf32>
    %c0_1 = arith.constant 0 : index
    %c0_2 = arith.constant 0 : index
    %1 = vector.load %arg1[%c0_1, %c0_2] : memref<128x32xf32, #tpu.memory_space<vmem>>, vector<128x32xf32>
    %cst = arith.constant dense<0.000000e+00> : vector<36x128xf32>
    %2 = tpu.matmul %0, %1, %cst {dimension_numbers = #tpu.dot_dimension_numbers<[1], [1], [0], [0], [0, 0, 1, 0], [], []>} : vector<36x32xf32>, vector<128x32xf32>, vector<36x128xf32> -> vector<36x128xf32>
    %c0_3 = arith.constant 0 : index
    %c0_4 = arith.constant 0 : index
    %3 = vector.load %arg3[%c0_3, %c0_4] : memref<36x1xf32, #tpu.memory_space<vmem>>, vector<36x1xf32>
    %4 = vector.broadcast %3 : vector<36x1xf32> to vector<36x128xf32>
    %5 = arith.addf %2, %4 : vector<36x128xf32>
    %c0_5 = arith.constant 0 : index
    %c0_6 = arith.constant 0 : index
    %6 = vector.load %arg4[%c0_5, %c0_6] : memref<36x128xf32, #tpu.memory_space<vmem>>, vector<36x128xf32>
    tpu.vector_store %arg4[%c0_5, %c0_6], %5 {strides = array<i32>} : memref<36x128xf32, #tpu.memory_space<vmem>>, vector<36x128xf32>,
    return
  }
  func.func @transform_0(%arg0: i32) -> (i32, i32) {
    %c0_i32 = arith.constant 0 : i32
    %c0_i32_0 = arith.constant 0 : i32
    return %arg0, %c0_i32 : i32, i32
  }
  func.func @transform_1(%arg0: i32) -> (i32, i32) {
    %c0_i32 = arith.constant 0 : i32
    %c0_i32_0 = arith.constant 0 : i32
    %c0_i32_1 = arith.constant 0 : i32
    return %c0_i32, %c0_i32_0 : i32, i32
  }
  func.func @transform_2(%arg0: i32) -> (i32, i32) {
    %c0_i32 = arith.constant 0 : i32
    %c0_i32_0 = arith.constant 0 : i32
    %c0_i32_1 = arith.constant 0 : i32
    return %c0_i32, %c0_i32_0 : i32, i32
  }
  func.func @transform_3(%arg0: i32) -> (i32, i32) {
    %c0_i32 = arith.constant 0 : i32
    %c0_i32_0 = arith.constant 0 : i32
    return %c0_i32, %arg0 : i32, i32
  }
}

</mosaic_0001>

<bundles_post_ra>
// kernel: tpu_custom_call.1
= control target key start
LH: loop header
LB: loop body
LE: loop exit
PB: predicated region body
PF: predicated region fallthrough
CT: control target
= control target key end

     0   :  { %vm66_vm0 = vcmask 261120   ;;  %v392_v1 = vmov 0.0   ;;  %vm393_vm1 = vmmov 0   ;;  %v394_v3 = vmov 0   ;;  %s578_s0 = inlined_call_operand.vmem [shape: f32[128,32], index: 0, kind: input, shape index: {}]   ;;  %s579_s1 = inlined_call_operand.vmem [shape: f32[36,32], index: 1, kind: input, shape index: {}]   ;;  %s580_s2 = inlined_call_operand.vmem [shape: f32[36,1], index: 2, kind: input, shape index: {}]   ;;  %s581_s3 = inlined_call_operand.hbm [shape: f32[36,128], index: 3, kind: output, shape index: {}]  }
   0x1   :  { %v35_v0 = vld [vmem:[%s578_s0 + $0x78] sm:$0xff]  ;;  %283 = vmatprep.subr.mxu0 %v392_v1  ;;  %330 = vmatprep.subr.mxu1 %v392_v1  ;;  %v34_v2 = vld [vmem:[%s578_s0 + $0x70] sm:$0xff]  ;;  %v33_v4 = vld [vmem:[%s578_s0 + $0x68] sm:$0xff] }
   0x2   :  { %284 = vmatpush3.xpose.msk.msra.mxu0 %vm66_vm0, %v35_v0  ;;  %346 = vmatpush3.xpose.msk.msra.mxu1 %vm66_vm0, %v35_v0  ;;  %v36_v5 = vld [vmem:[%s580_s2] sm:$0xff]  ;;  %v38_v6 = vld [vmem:[%s580_s2 + $0x10] sm:$0xff] }
   0x3   :  { %285 = vmatprep.subr.mxu0 %v392_v1  ;;  %331 = vmatprep.subr.mxu1 %v392_v1 }
   0x4   :  { %315 = vmatprep.mubr.msk.f32.mxu0 %vm393_vm1, %v392_v1  ;;  %324 = vmatprep.mubr.msk.f32.mxu1 %vm393_vm1, %v392_v1 }
   0x5   :  { %368 = vset.pattern.permute.xlu0 %v394_v3  ;;  %369 = vset.pattern.permute.xlu1 %v394_v3 }
   0x6   :  { %286 = vmatpush3.xpose.msk.msra.mxu0 %vm66_vm0, %v34_v2  ;;  %347 = vmatpush3.xpose.msk.msra.mxu1 %vm66_vm0, %v34_v2 }
   0x7   :  { %287 = vmatprep.subr.mxu0 %v392_v1  ;;  %332 = vmatprep.subr.mxu1 %v392_v1 }
   0x8   :  { %43 = vperm.xlu0 %368, %v36_v5   ;;  %53 = vperm.xlu1 %369, %v38_v6  }
   0x9   :  { %8 = vsyncpa [#allocation3], 0  ;;  %v37_v7 = vld [vmem:[%s580_s2 + $0x8] sm:$0xff]  ;;  %v39_v8 = vld [vmem:[%s580_s2 + $0x18] sm:$0xff] }
   0xa   :  { %288 = vmatpush3.xpose.msk.msra.mxu0 %vm66_vm0, %v33_v4  ;;  %348 = vmatpush3.xpose.msk.msra.mxu1 %vm66_vm0, %v33_v4  ;;  %v32_v9 = vld [vmem:[%s578_s0 + $0x60] sm:$0xff]  ;;  %v31_v11 = vld [vmem:[%s578_s0 + $0x58] sm:$0xff]  ;;  %v30_v12 = vld [vmem:[%s578_s0 + $0x50] sm:$0xff] }
   0xb   :  { %289 = vmatprep.subr.mxu0 %v392_v1  ;;  %333 = vmatprep.subr.mxu1 %v392_v1  ;;  %v40_v10 = vld [vmem:[%s580_s2 + $0x20] sm:$0xf]  ;;  %v29_v13 = vld [vmem:[%s578_s0 + $0x48] sm:$0xff]  ;;  %v27_v15 = vld [vmem:[%s578_s0 + $0x38] sm:$0xff] }
   0xc   :  { %48 = vperm.xlu0 %368, %v37_v7   ;;  %58 = vperm.xlu1 %369, %v39_v8   ;;  %v28_v14 = vld [vmem:[%s578_s0 + $0x40] sm:$0xff]  ;;  %v26_v16 = vld [vmem:[%s578_s0 + $0x30] sm:$0xff]  ;;  %v25_v17 = vld [vmem:[%s578_s0 + $0x28] sm:$0xff] }
   0xd   :  { %v24_v18 = vld [vmem:[%s578_s0 + $0x20] sm:$0xff]  ;;  %v23_v19 = vld [vmem:[%s578_s0 + $0x18] sm:$0xff]  ;;  %v22_v20 = vld [vmem:[%s578_s0 + $0x10] sm:$0xff] }
   0xe   :  { %290 = vmatpush3.xpose.msk.msra.mxu0 %vm66_vm0, %v32_v9  ;;  %349 = vmatpush3.xpose.msk.msra.mxu1 %vm66_vm0, %v32_v9  ;;  %v21_v21 = vld [vmem:[%s578_s0 + $0x8] sm:$0xff]  ;;  %v20_v22 = vld [vmem:[%s578_s0] sm:$0xff]  ;;  %v18_v24 = vld [vmem:[%s579_s1 + $0x18] sm:$0xff] }
   0xf   :  { %291 = vmatprep.subr.mxu0 %v392_v1  ;;  %334 = vmatprep.subr.mxu1 %v392_v1  ;;  %v15_v23 = vld [vmem:[%s579_s1] sm:$0xff]  ;;  %v16_v25 = vld [vmem:[%s579_s1 + $0x8] sm:$0xff]  ;;  %v17_v27 = vld [vmem:[%s579_s1 + $0x10] sm:$0xff] }
  0x10   :  { %63 = vperm.xlu0 %368, %v40_v10   ;;  %v19_v26 = vld [vmem:[%s579_s1 + $0x20] sm:$0xf]  ;;  %s395_s1 = smov [#allocation2]  }
  0x11   :  { %s230_s7 = sshll.u32 %s395_s1, 4  ;;  %s231_s7 = int_to_ptr.vmem [resolvable:$true] %s230_s7 }
  0x12   :  { %292 = vmatpush3.xpose.msk.msra.mxu0 %vm66_vm0, %v31_v11  ;;  %350 = vmatpush3.xpose.msk.msra.mxu1 %vm66_vm0, %v31_v11  ;;  %s370_s8 = scalar_lea.vmem %s231_s7, 640  ;;  %p375_p1 = scmp.lt.s32.totalorder %s231_s7, %s231_s7 }
  0x13   :  { %293 = vmatprep.subr.mxu0 %v392_v1  ;;  %335 = vmatprep.subr.mxu1 %v392_v1  ;;  %p371_p0 = scmp.ne.s32.totalorder %s231_s7, %s370_s8  ;;  %p376_p2 = scmp.lt.s32.totalorder %s370_s8, %s370_s8 }
  0x15   :  { %p377_p3 = por %p376_p2, %p375_p1 }
  0x16   :  { %294 = vmatpush3.xpose.msk.msra.mxu0 %vm66_vm0, %v30_v12  ;;  %351 = vmatpush3.xpose.msk.msra.mxu1 %vm66_vm0, %v30_v12 }
  0x17   :  { %295 = vmatprep.subr.mxu0 %v392_v1  ;;  %336 = vmatprep.subr.mxu1 %v392_v1  ;;  %p378_p4 = pnand %p377_p3, %p371_p0 }
  0x1a   :  { %296 = vmatpush3.xpose.msk.msra.mxu0 %vm66_vm0, %v29_v13  ;;  %352 = vmatpush3.xpose.msk.msra.mxu1 %vm66_vm0, %v29_v13 }
  0x1b   :  { %297 = vmatprep.subr.mxu0 %v392_v1  ;;  %337 = vmatprep.subr.mxu1 %v392_v1 }
  0x1e   :  { %298 = vmatpush3.xpose.msk.msra.mxu0 %vm66_vm0, %v28_v14  ;;  %353 = vmatpush3.xpose.msk.msra.mxu1 %vm66_vm0, %v28_v14 }
  0x1f   :  { %299 = vmatprep.subr.mxu0 %v392_v1  ;;  %338 = vmatprep.subr.mxu1 %v392_v1 }
  0x22   :  { %300 = vmatpush3.xpose.msk.msra.mxu0 %vm66_vm0, %v27_v15  ;;  %354 = vmatpush3.xpose.msk.msra.mxu1 %vm66_vm0, %v27_v15 }
  0x23   :  { %301 = vmatprep.subr.mxu0 %v392_v1  ;;  %339 = vmatprep.subr.mxu1 %v392_v1 }
  0x26   :  { %302 = vmatpush3.xpose.msk.msra.mxu0 %vm66_vm0, %v26_v16  ;;  %355 = vmatpush3.xpose.msk.msra.mxu1 %vm66_vm0, %v26_v16 }
  0x27   :  { %303 = vmatprep.subr.mxu0 %v392_v1  ;;  %340 = vmatprep.subr.mxu1 %v392_v1 }
  0x2a   :  { %304 = vmatpush3.xpose.msk.msra.mxu0 %vm66_vm0, %v25_v17  ;;  %356 = vmatpush3.xpose.msk.msra.mxu1 %vm66_vm0, %v25_v17 }
  0x2b   :  { %305 = vmatprep.subr.mxu0 %v392_v1  ;;  %341 = vmatprep.subr.mxu1 %v392_v1 }
  0x2e   :  { %306 = vmatpush3.xpose.msk.msra.mxu0 %vm66_vm0, %v24_v18  ;;  %357 = vmatpush3.xpose.msk.msra.mxu1 %vm66_vm0, %v24_v18 }
  0x2f   :  { %307 = vmatprep.subr.mxu0 %v392_v1  ;;  %342 = vmatprep.subr.mxu1 %v392_v1 }
  0x32   :  { %308 = vmatpush3.xpose.msk.msra.mxu0 %vm66_vm0, %v23_v19  ;;  %358 = vmatpush3.xpose.msk.msra.mxu1 %vm66_vm0, %v23_v19 }
  0x33   :  { %309 = vmatprep.subr.mxu0 %v392_v1  ;;  %343 = vmatprep.subr.mxu1 %v392_v1 }
  0x36   :  { %310 = vmatpush3.xpose.msk.msra.mxu0 %vm66_vm0, %v22_v20  ;;  %359 = vmatpush3.xpose.msk.msra.mxu1 %vm66_vm0, %v22_v20 }
  0x37   :  { %311 = vmatprep.subr.mxu0 %v392_v1  ;;  %344 = vmatprep.subr.mxu1 %v392_v1 }
  0x3a   :  { %312 = vmatpush3.xpose.msk.msra.mxu0 %vm66_vm0, %v21_v21  ;;  %360 = vmatpush3.xpose.msk.msra.mxu1 %vm66_vm0, %v21_v21 }
  0x3b   :  { %313 = vmatprep.subr.mxu0 %v392_v1  ;;  %345 = vmatprep.subr.mxu1 %v392_v1 }
  0x3e   :  { %314 = vmatpush3.xpose.msk.msra.mxu0 %vm66_vm0, %v20_v22  ;;  %361 = vmatpush3.xpose.msk.msra.mxu1 %vm66_vm0, %v20_v22 }
  0x41   :  { %316 = vmatmul.mubr.msk.f32.vlgmr.msra.gmra.mxu0 %vm66_vm0, %v15_v23  ;;  %325 = vmatmul.mubr.msk.f32.vlgmr.msra.gmra.mxu1 %vm66_vm0, %v18_v24 }
  0x42   :  { %318 = vmatprep.mubr.msk.f32.mxu0 %vm393_vm1, %v392_v1  ;;  %327 = vmatprep.mubr.msk.f32.mxu1 %vm393_vm1, %v392_v1 }
  0x45   :  { %319 = vmatmul.mubr.msk.f32.gmra.mxu0 %vm66_vm0, %v16_v25  ;;  %328 = vmatmul.mubr.msk.f32.gmra.mxu1 %vm66_vm0, %v19_v26 }
  0x46   :  { %321 = vmatprep.mubr.msk.f32.mxu0 %vm393_vm1, %v392_v1 }
  0x49   :  { %322 = vmatmul.mubr.msk.f32.gmra.mxu0 %vm66_vm0, %v17_v27 }
  0x83   :  { %v44_v28 = vpop.permute.xlu0 %43  ;;  %v54_v29 = vpop.permute.xlu1 %53 }
  0x87   :  { %v49_v30 = vpop.permute.xlu0 %48  ;;  %v59_v31 = vpop.permute.xlu1 %58 }
  0x8b   :  { %v64_v38 = vpop.permute.xlu0 %63 }
 0x101   :  { %v196_v32 = vpop.f32.mrf.mxu0  ;;  %v211_v33 = vpop.f32.mrf.mxu1 }
 0x102   :  { %v197_v34 = vadd.f32 %v196_v32, %v44_v28  ;;  %v212_v35 = vadd.f32 %v211_v33, %v59_v31 }
 0x103   :  { %v317_v36 = vpop.f32.mrf.mxu0  ;;  %v326_v37 = vpop.f32.mrf.mxu1 }
 0x104   :  { %220 = vst [vmem:[#allocation2] sm:$0xff] %v197_v34  ;;  %223 = vst [vmem:[#allocation2 + $0x18] sm:$0xff] %v212_v35 }
 0x105   :  { %v201_v39 = vpop.f32.mrf.mxu0  ;;  %v216_v40 = vpop.f32.mrf.mxu1 }
 0x106   :  { %v202_v41 = vadd.f32 %v201_v39, %v49_v30  ;;  %v217_v42 = vadd.f32 %v216_v40, %v64_v38 }
 0x107   :  { %v320_v43 = vpop.f32.mrf.mxu0  ;;  %v329_v44 = vpop.f32.mrf.mxu1 }
 0x108   :  { %221 = vst [vmem:[#allocation2 + $0x8] sm:$0xff] %v202_v41  ;;  %224 = vst [vmem:[#allocation2 + $0x20] sm:$0xf] %v217_v42 }
 0x109   :  { %v206_v45 = vpop.f32.mrf.mxu0 }
 0x10a   :  { %v207_v46 = vadd.f32 %v206_v45, %v54_v29 }
 0x10b   :  { %v323_v47 = vpop.f32.mrf.mxu0 }
 0x10c   :  { %222 = vst [vmem:[#allocation2 + $0x10] sm:$0xff] %v207_v46 }
 0x10d   :  { %381 = shalt.err (!%p378_p4)
}
 0x10e   :  { %s396_s9 = smov 128   ;;  %s397_s10 = smov 8  }
 0x10f   :  { %236 = dma.vmem_to_hbm [thread:$0]  %s231_s7, 640, %s581_s3, [#allocation3], %s396_s9, %s396_s9, %s397_s10  }
 0x110   :  { %390 = dma.done.wait [#allocation3], 640  }
 0x111   :  { %391 = vsyncadd [#allocation3], 4294966656 }
 0x112   :  { %240 = vsyncpa [#allocation3], 1 }

</bundles_post_ra>
